<compile_context>
chip_gen: v6e
topology: v6e:2x2x1
jax: 0.10.0
libtpu: 0.0.40
codegen_flags: <defaults>
</compile_context>

<pallas_src>
import functools

import jax
import jax.numpy as jnp
from jax import lax
from jax.experimental import pallas as pl
from jax.experimental.pallas import tpu as pltpu


def _tserkd_kernel(s_ref, tp_ref, logz_ref, klx_ref, ent_ref, *,
                   inv_tau, ts, total_t, batch):
    """One grid step: `ts` time steps of student logits -> 3 partial sums."""
    # ---- student softmax statistics for this block: (ts, B, K) ----
    s = s_ref[...].astype(jnp.float32) * inv_tau            # logits / tau
    s_max = jnp.max(s, axis=-1, keepdims=True)               # (ts, B, 1)
    s_exp = jnp.exp(s - s_max)
    s_sum = jnp.sum(s_exp, axis=-1, keepdims=True)           # (ts, B, 1)
    s_logz = jnp.log(s_sum) + s_max                          # logsumexp(s/tau)
    s_logp = s - s_logz                                      # log_softmax(s/tau)

    # ---- teacher probabilities (precomputed once in the wrapper, resident) ----
    t_p = tp_ref[...].astype(jnp.float32)                    # (B, K)

    # ---- per-row partial quantities (row = one (time, batch) pair) ----
    logz_rows = s_logz                                                       # (ts, B, 1)
    klx_rows = -jnp.sum(t_p[None, :, :] * s_logp, axis=-1, keepdims=True)    # -sum_k p_t*log q_s
    # entropy: -(sum_k s_exp*s_logp) / s_sum  -> one divide per row, not per element
    ent_rows = -jnp.sum(s_exp * s_logp, axis=-1, keepdims=True) / s_sum

    if total_t % ts != 0:
        # Ragged last block: mask rows belonging to padded (out-of-range) time steps.
        t0 = pl.program_id(0) * ts
        row_t = lax.broadcasted_iota(jnp.int32, (ts, batch, 1), 0) + t0
        valid = row_t < total_t
        zero = jnp.zeros_like(logz_rows)
        logz_rows = jnp.where(valid, logz_rows, zero)
        klx_rows = jnp.where(valid, klx_rows, zero)
        ent_rows = jnp.where(valid, ent_rows, zero)

    # One scalar partial per block, broadcast over a full (8,128) tile (unmasked store).
    logz_ref[...] = jnp.full(logz_ref.shape, jnp.sum(logz_rows), jnp.float32)
    klx_ref[...] = jnp.full(klx_ref.shape, jnp.sum(klx_rows), jnp.float32)
    ent_ref[...] = jnp.full(ent_ref.shape, jnp.sum(ent_rows), jnp.float32)


def tserkd_loss(t_logits, s_logits, targets, *, alpha, gamma, tau=1.0,
                block_bytes=2 * 1024 * 1024):
    """Returns (total_loss, ce_loss, kl_loss, e_reg) as float32 scalars.

    t_logits: [B, K] teacher logits; s_logits: [T, B, K] student logits; targets: [B] int.
    """
    T, B, K = s_logits.shape
    alpha = float(alpha)
    gamma = float(gamma)
    tau = float(tau)
    inv_tau = 1.0 / tau

    # ---- plain-JAX glue (computed once per call, hoisted out of the kernel) ----
    # Teacher distribution and its per-call constant C = sum_b sum_k p*log p.
    t32 = t_logits.astype(jnp.float32) * inv_tau
    t_logp = jax.nn.log_softmax(t32, axis=-1)
    t_p = jnp.exp(t_logp)                                     # (B, K)
    tea_c = jnp.sum(t_p * t_logp)

    # Target-logit gather replaces the one-hot input and the per-step CE multiply/reduce.
    idx = jnp.broadcast_to(targets.astype(jnp.int32)[None, :, None], (T, B, 1))
    s_tgt_sum = jnp.sum(jnp.take_along_axis(s_logits.astype(jnp.float32), idx, axis=-1))

    # ---- tile sizing: big time-step blocks (~block_bytes of f32 student logits each) ----
    ts = int(max(1, min(T, block_bytes // (B * K * 4))))
    num_blocks = pl.cdiv(T, ts)

    kernel = functools.partial(_tserkd_kernel, inv_tau=inv_tau, ts=ts,
                               total_t=T, batch=B)

    part_shape = jax.ShapeDtypeStruct((num_blocks, 8, 128), jnp.float32)
    out_spec = pl.BlockSpec((1, 8, 128), lambda t: (t, 0, 0))

    logz_p, klx_p, ent_p = pl.pallas_call(
        kernel,
        out_shape=(part_shape, part_shape, part_shape),
        grid_spec=pltpu.PrefetchScalarGridSpec(
            num_scalar_prefetch=0,
            grid=(num_blocks,),
            in_specs=[
                pl.BlockSpec((ts, B, K), lambda t: (t, 0, 0)),  # student block (ts steps)
                pl.BlockSpec((B, K), lambda t: (0, 0)),          # teacher probs (resident)
            ],
            out_specs=(out_spec, out_spec, out_spec),
        ),
        compiler_params=pltpu.CompilerParams(
            dimension_semantics=("parallel",),       # independent blocks -> both TCs on v7x
            vmem_limit_bytes=48 * 1024 * 1024),
    )(s_logits, t_p)

    # ---- final combine over per-block partials (tree-reduced in f32 in the wrapper) ----
    denom = jnp.float32(T * B)
    logz_sum = jnp.sum(logz_p[:, 0, 0])
    klx_sum = jnp.sum(klx_p[:, 0, 0])
    ent_sum = jnp.sum(ent_p[:, 0, 0])

    ce = (logz_sum - inv_tau * s_tgt_sum) / denom
    kl = (T * tea_c + klx_sum) / denom
    ent = ent_sum / denom
    total = (1.0 - alpha) * ce + alpha * (tau ** 2) * kl - gamma * ent
    return total, ce, kl, ent


def _reference(t_logits, s_logits, targets, *, alpha, gamma, tau):
    """Pure-JAX reference mirroring the PyTorch TSERKDLoss module."""
    T, B, K = s_logits.shape
    s_logp = jax.nn.log_softmax(s_logits / tau, axis=-1)
    s_p = jax.nn.softmax(s_logits / tau, axis=-1)
    t_logp = jax.nn.log_softmax(t_logits / tau, axis=-1)
    t_p = jax.nn.softmax(t_logits / tau, axis=-1)

    onehot = jax.nn.one_hot(targets, K, dtype=jnp.float32)
    ce = jnp.mean(-jnp.sum(onehot[None] * s_logp, axis=-1))
    kl = jnp.sum(t_p[None] * (t_logp[None] - s_logp)) / (T * B)
    ent = jnp.mean(-jnp.sum(s_p * s_logp, axis=-1))
    total = (1 - alpha) * ce + alpha * tau ** 2 * kl - gamma * ent
    return total, ce, kl, ent


if __name__ == "__main__":
    T, B, K = 4, 8, 10
    alpha, gamma, tau = 0.7, 0.01, 2.0

    key = jax.random.PRNGKey(0)
    k1, k2, k3 = jax.random.split(key, 3)
    t_logits = jax.random.normal(k1, (B, K), dtype=jnp.float32)
    s_logits = jax.random.normal(k2, (T, B, K), dtype=jnp.float32)
    targets = jax.random.randint(k3, (B,), 0, K, dtype=jnp.int32)

    total, ce, kl, ent = tserkd_loss(
        t_logits, s_logits, targets, alpha=alpha, gamma=gamma, tau=tau)
    jax.block_until_ready((total, ce, kl, ent))

    ref_total, ref_ce, ref_kl, ref_ent = _reference(
        t_logits, s_logits, targets, alpha=alpha, gamma=gamma, tau=tau)

    assert jnp.allclose(total, ref_total, atol=1e-5, rtol=1e-5)
    assert jnp.allclose(ce, ref_ce, atol=1e-5, rtol=1e-5)
    assert jnp.allclose(kl, ref_kl, atol=1e-5, rtol=1e-5)
    assert jnp.allclose(ent, ref_ent, atol=1e-5, rtol=1e-5)

    print("KERNEL_OK")
</pallas_src>

<mosaic_0001>
module attributes {stable_mosaic.version = 11 : i64} {
  func.func @_tserkd_kernel(%arg0: i32, %arg1: memref<4x8x10xf32, #tpu.memory_space<vmem>>, %arg2: memref<8x10xf32, #tpu.memory_space<vmem>>, %arg3: memref<1x8x128xf32, #tpu.memory_space<vmem>>, %arg4: memref<1x8x128xf32, #tpu.memory_space<vmem>>, %arg5: memref<1x8x128xf32, #tpu.memory_space<vmem>>) attributes {dimension_semantics = [#tpu.dimension_semantics<parallel>], iteration_bounds = array<i64: 1>, scalar_prefetch = 0 : i64, scratch_operands = 0 : i64, tpu.core_type = #tpu.core_type<tc>, window_params = [{transform_indices = @transform_0, window_bounds = array<i64: 4, 8, 10>}, {pipeline_mode = #tpu.pipeline_mode<synchronous>, transform_indices = @transform_1, window_bounds = array<i64: 8, 10>}, {transform_indices = @transform_2, window_bounds = array<i64: 1, 8, 128>}, {transform_indices = @transform_3, window_bounds = array<i64: 1, 8, 128>}, {transform_indices = @transform_4, window_bounds = array<i64: 1, 8, 128>}]} {
    %c0 = arith.constant 0 : index
    %c0_0 = arith.constant 0 : index
    %c0_1 = arith.constant 0 : index
    %0 = vector.load %arg1[%c0, %c0_0, %c0_1] : memref<4x8x10xf32, #tpu.memory_space<vmem>>, vector<4x8x10xf32>
    %cst = arith.constant 5.000000e-01 : f32
    %1 = vector.broadcast %cst : f32 to vector<4x8x10xf32>
    %2 = arith.mulf %0, %1 : vector<4x8x10xf32>
    %cst_2 = arith.constant dense<0xFF800000> : vector<4x8xf32>
    %3 = vector.multi_reduction <maximumf>, %2, %cst_2 [2] : vector<4x8x10xf32> to vector<4x8xf32>
    %4 = vector.shape_cast %3 : vector<4x8xf32> to vector<4x8x1xf32>
    %5 = vector.broadcast %4 : vector<4x8x1xf32> to vector<4x8x10xf32>
    %6 = arith.subf %2, %5 : vector<4x8x10xf32>
    %7 = math.exp %6 : vector<4x8x10xf32>
    %cst_3 = arith.constant dense<0.000000e+00> : vector<4x8xf32>
    %8 = vector.multi_reduction <add>, %7, %cst_3 [2] : vector<4x8x10xf32> to vector<4x8xf32>
    %9 = vector.shape_cast %8 : vector<4x8xf32> to vector<4x8x1xf32>
    %10 = math.log %9 : vector<4x8x1xf32>
    %11 = arith.addf %10, %4 : vector<4x8x1xf32>
    %12 = vector.broadcast %11 : vector<4x8x1xf32> to vector<4x8x10xf32>
    %13 = arith.subf %2, %12 : vector<4x8x10xf32>
    %c0_4 = arith.constant 0 : index
    %c0_5 = arith.constant 0 : index
    %14 = vector.load %arg2[%c0_4, %c0_5] : memref<8x10xf32, #tpu.memory_space<vmem>>, vector<8x10xf32>
    %15 = vector.shape_cast %14 : vector<8x10xf32> to vector<1x8x10xf32>
    %16 = vector.broadcast %15 : vector<1x8x10xf32> to vector<4x8x10xf32>
    %17 = arith.mulf %16, %13 : vector<4x8x10xf32>
    %cst_6 = arith.constant dense<0.000000e+00> : vector<4x8xf32>
    %18 = vector.multi_reduction <add>, %17, %cst_6 [2] : vector<4x8x10xf32> to vector<4x8xf32>
    %19 = vector.shape_cast %18 : vector<4x8xf32> to vector<4x8x1xf32>
    %cst_7 = arith.constant 0.000000e+00 : f32
    %20 = vector.broadcast %cst_7 : f32 to vector<4x8x1xf32>
    %21 = arith.subf %20, %19 : vector<4x8x1xf32>
    %22 = arith.mulf %7, %13 : vector<4x8x10xf32>
    %cst_8 = arith.constant dense<0.000000e+00> : vector<4x8xf32>
    %23 = vector.multi_reduction <add>, %22, %cst_8 [2] : vector<4x8x10xf32> to vector<4x8xf32>
    %24 = vector.shape_cast %23 : vector<4x8xf32> to vector<4x8x1xf32>
    %cst_9 = arith.constant 0.000000e+00 : f32
    %25 = vector.broadcast %cst_9 : f32 to vector<4x8x1xf32>
    %26 = arith.subf %25, %24 : vector<4x8x1xf32>
    %27 = arith.divf %26, %9 : vector<4x8x1xf32>
    %28 = vector.shape_cast %11 : vector<4x8x1xf32> to vector<1x4x8x1xf32>
    %cst_10 = arith.constant dense<0.000000e+00> : vector<1xf32>
    %29 = vector.multi_reduction <add>, %28, %cst_10 [1, 2, 3] : vector<1x4x8x1xf32> to vector<1xf32>
    %30 = vector.shape_cast %29 : vector<1xf32> to vector<1x1x1x1xf32>
    %31 = vector.extract %30[0, 0, 0, 0] : f32 from vector<1x1x1x1xf32>
    %32 = vector.broadcast %31 : f32 to vector<1x8x128xf32>
    %c0_11 = arith.constant 0 : index
    %c0_12 = arith.constant 0 : index
    %c0_13 = arith.constant 0 : index
    %33 = vector.load %arg3[%c0_11, %c0_12, %c0_13] : memref<1x8x128xf32, #tpu.memory_space<vmem>>, vector<1x8x128xf32>
    tpu.vector_store %arg3[%c0_11, %c0_12, %c0_13], %32 {strides = array<i32>} : memref<1x8x128xf32, #tpu.memory_space<vmem>>, vector<1x8x128xf32>,
    %34 = vector.shape_cast %21 : vector<4x8x1xf32> to vector<1x4x8x1xf32>
    %cst_14 = arith.constant dense<0.000000e+00> : vector<1xf32>
    %35 = vector.multi_reduction <add>, %34, %cst_14 [1, 2, 3] : vector<1x4x8x1xf32> to vector<1xf32>
    %36 = vector.shape_cast %35 : vector<1xf32> to vector<1x1x1x1xf32>
    %37 = vector.extract %36[0, 0, 0, 0] : f32 from vector<1x1x1x1xf32>
    %38 = vector.broadcast %37 : f32 to vector<1x8x128xf32>
    %c0_15 = arith.constant 0 : index
    %c0_16 = arith.constant 0 : index
    %c0_17 = arith.constant 0 : index
    %39 = vector.load %arg4[%c0_15, %c0_16, %c0_17] : memref<1x8x128xf32, #tpu.memory_space<vmem>>, vector<1x8x128xf32>
    tpu.vector_store %arg4[%c0_15, %c0_16, %c0_17], %38 {strides = array<i32>} : memref<1x8x128xf32, #tpu.memory_space<vmem>>, vector<1x8x128xf32>,
    %40 = vector.shape_cast %27 : vector<4x8x1xf32> to vector<1x4x8x1xf32>
    %cst_18 = arith.constant dense<0.000000e+00> : vector<1xf32>
    %41 = vector.multi_reduction <add>, %40, %cst_18 [1, 2, 3] : vector<1x4x8x1xf32> to vector<1xf32>
    %42 = vector.shape_cast %41 : vector<1xf32> to vector<1x1x1x1xf32>
    %43 = vector.extract %42[0, 0, 0, 0] : f32 from vector<1x1x1x1xf32>
    %44 = vector.broadcast %43 : f32 to vector<1x8x128xf32>
    %c0_19 = arith.constant 0 : index
    %c0_20 = arith.constant 0 : index
    %c0_21 = arith.constant 0 : index
    %45 = vector.load %arg5[%c0_19, %c0_20, %c0_21] : memref<1x8x128xf32, #tpu.memory_space<vmem>>, vector<1x8x128xf32>
    tpu.vector_store %arg5[%c0_19, %c0_20, %c0_21], %44 {strides = array<i32>} : memref<1x8x128xf32, #tpu.memory_space<vmem>>, vector<1x8x128xf32>,
    return
  }
  func.func @transform_0(%arg0: i32) -> (i32, i32, i32) {
    %c0_i32 = arith.constant 0 : i32
    %c0_i32_0 = arith.constant 0 : i32
    %c0_i32_1 = arith.constant 0 : i32
    return %arg0, %c0_i32, %c0_i32_0 : i32, i32, i32
  }
  func.func @transform_1(%arg0: i32) -> (i32, i32) {
    %c0_i32 = arith.constant 0 : i32
    %c0_i32_0 = arith.constant 0 : i32
    %c0_i32_1 = arith.constant 0 : i32
    return %c0_i32, %c0_i32_0 : i32, i32
  }
  func.func @transform_2(%arg0: i32) -> (i32, i32, i32) {
    %c0_i32 = arith.constant 0 : i32
    %c0_i32_0 = arith.constant 0 : i32
    %c0_i32_1 = arith.constant 0 : i32
    return %arg0, %c0_i32, %c0_i32_0 : i32, i32, i32
  }
  func.func @transform_3(%arg0: i32) -> (i32, i32, i32) {
    %c0_i32 = arith.constant 0 : i32
    %c0_i32_0 = arith.constant 0 : i32
    %c0_i32_1 = arith.constant 0 : i32
    return %arg0, %c0_i32, %c0_i32_0 : i32, i32, i32
  }
  func.func @transform_4(%arg0: i32) -> (i32, i32, i32) {
    %c0_i32 = arith.constant 0 : i32
    %c0_i32_0 = arith.constant 0 : i32
    %c0_i32_1 = arith.constant 0 : i32
    return %arg0, %c0_i32, %c0_i32_0 : i32, i32, i32
  }
}

</mosaic_0001>

<bundles_post_ra>
// kernel: tpu_custom_call.1
= control target key start
LH: loop header
LB: loop body
LE: loop exit
PB: predicated region body
PF: predicated region fallthrough
CT: control target
= control target key end

     0   :  { %10 = vsyncpa [#allocation3], 0  ;;  %s480_s0 = inlined_call_operand.hbm [shape: f32[4,8,10], index: 0, kind: input, shape index: {}]   ;;  %s481_s1 = inlined_call_operand.hbm [shape: f32[8,10], index: 1, kind: input, shape index: {}]   ;;  %s482_s2 = inlined_call_operand.hbm [shape: f32[1,8,128], index: 2, kind: output, shape index: {0}]   ;;  %s483_s3 = inlined_call_operand.hbm [shape: f32[1,8,128], index: 3, kind: output, shape index: {1}]   ;;  %s484_s4 = inlined_call_operand.hbm [shape: f32[1,8,128], index: 4, kind: output, shape index: {2}]  }
   0x1   :  { %11 = vsyncpa [#allocation6], 0 }
   0x2   :  { %12 = vsyncpa [#allocation4], 0 }
   0x3   :  { %13 = vsyncpa [#allocation9], 0  ;;  %s395_s15 = smov [#allocation2]  }
   0x4   :  { %s19_s16 = sshll.u32 %s395_s15, 4  ;;  %s20_s16 = int_to_ptr.vmem [resolvable:$true] %s19_s16 }
   0x5   :  { %s295_s17 = scalar_lea.vmem %s20_s16, 512  ;;  %p300_p1 = scmp.lt.s32.totalorder %s20_s16, %s20_s16 }
   0x6   :  { %p296_p0 = scmp.ne.s32.totalorder %s20_s16, %s295_s17  ;;  %p301_p2 = scmp.lt.s32.totalorder %s295_s17, %s295_s17 }
   0x8   :  { %p302_p3 = por %p301_p2, %p300_p1 }
   0xa   :  { %p303_p4 = pnand %p302_p3, %p296_p0 }
   0xc   :  { %306 = shalt.err (!%p303_p4)
}
   0xd   :  { %s396_s18 = smov 128   ;;  %s397_s19 = smov 8  }
   0xe   :  { %25 = dma.hbm_to_vmem [thread:$0]  %s480_s0, 512, %s20_s16, [#allocation3], %s396_s18, %s396_s18, %s397_s19  }
   0xf   :  { %s398_s22 = smov [#allocation5]  }
  0x10   :  { %s32_s23 = sshll.u32 %s398_s22, 4  ;;  %s33_s23 = int_to_ptr.vmem [resolvable:$true] %s32_s23 }
  0x11   :  { %s315_s24 = scalar_lea.vmem %s33_s23, 128  ;;  %p320_p6 = scmp.lt.s32.totalorder %s33_s23, %s33_s23 }
  0x12   :  { %p316_p5 = scmp.ne.s32.totalorder %s33_s23, %s315_s24  ;;  %p321_p7 = scmp.lt.s32.totalorder %s315_s24, %s315_s24 }
  0x14   :  { %p322_p8 = por %p321_p7, %p320_p6 }
  0x16   :  { %p323_p9 = pnand %p322_p8, %p316_p5 }
  0x18   :  { %326 = shalt.err (!%p323_p9)
}
  0x19   :  { %35 = dma.hbm_to_vmem [thread:$0]  %s481_s1, 128, %s33_s23, [#allocation6]  }
  0x1a   :  { %387 = dma.done.wait [#allocation3], 512  }
  0x1b   :  { %388 = vsyncadd [#allocation3], 4294966784 }
  0x1c   :  { %389 = dma.done.wait [#allocation6], 128  }
  0x1d   :  { %390 = vsyncadd [#allocation6], 4294967168  ;;  %v42_v0 = vld [vmem:[#allocation2] sm:$0xff]  ;;  %vm50_vm0 = vcmask 80896   ;;  %v44_v1 = vld [vmem:[#allocation2 + $0x10] sm:$0xff]  ;;  %vm152_vm1 = vcmask 7168  }
  0x1e   :  { %v43_v2 = vld [vmem:[#allocation2 + $0x8] sm:$0xff]  ;;  %v46_v3 = vmul.f32 0.5, %v42_v0  ;;  %v433_v4 = vmul.f32 0.5, %v44_v1  ;;  %v45_v6 = vld [vmem:[#allocation2 + $0x18] sm:$0xff]  ;;  %v103_v42 = vld [vmem:[#allocation5] sm:$0xff]  ;;  %s399_s1 = smov [#allocation7]  }
  0x1f   :  { %v47_v5 = vmul.f32 0.5, %v43_v2  ;;  %v435_v7 = vmul.f32 0.5, %v45_v6  ;;  %s213_s27 = sshll.u32 %s399_s1, 4  ;;  %s214_s27 = int_to_ptr.vmem [resolvable:$true] %s213_s27 }
  0x20   :  { %v51_v8 = vsel %vm50_vm0, %v46_v3, -inf  ;;  %v57_v9 = vsel %vm50_vm0, %v433_v4, -inf  ;;  %s327_s28 = scalar_lea.vmem %s214_s27, 128  ;;  %p332_p11 = scmp.lt.s32.totalorder %s214_s27, %s214_s27 }
  0x21   :  { %52 = vmax.xlane.f32.xlu0 %v51_v8  ;;  %58 = vmax.xlane.f32.xlu1 %v57_v9  ;;  %v54_v10 = vsel %vm50_vm0, %v47_v5, -inf  ;;  %v60_v11 = vsel %vm50_vm0, %v435_v7, -inf  ;;  %p328_p10 = scmp.ne.s32.totalorder %s214_s27, %s327_s28  ;;  %p333_p12 = scmp.lt.s32.totalorder %s327_s28, %s327_s28 }
  0x23   :  { %p334_p13 = por %p333_p12, %p332_p11 }
  0x25   :  { %55 = vmax.xlane.f32.xlu0 %v54_v10  ;;  %61 = vmax.xlane.f32.xlu1 %v60_v11  ;;  %p335_p0 = pnand %p334_p13, %p328_p10 }
  0xaa   :  { %v53_v12 = vpop.xlane.xlu0 %52  ;;  %v59_v13 = vpop.xlane.xlu1 %58 }
  0xab   :  { %v63_v14 = vsub.f32 %v46_v3, %v53_v12  ;;  %v65_v15 = vsub.f32 %v433_v4, %v59_v13 }
  0xad   :  { %v67_v16 = vmul.f32 1.442695, %v63_v14  ;;  %v71_v17 = vmul.f32 1.442695, %v65_v15 }
  0xae   :  { %v56_v18 = vpop.xlane.xlu0 %55  ;;  %v62_v19 = vpop.xlane.xlu1 %61 }
  0xaf   :  { %263 = vpow2.f32 %v67_v16  ;;  %v64_v20 = vsub.f32 %v47_v5, %v56_v18  ;;  %v66_v21 = vsub.f32 %v435_v7, %v62_v19 }
  0xb0   :  { %265 = vpow2.f32 %v71_v17 }
  0xb1   :  { %v69_v22 = vmul.f32 1.442695, %v64_v20  ;;  %v73_v23 = vmul.f32 1.442695, %v66_v21 }
  0xb3   :  { %267 = vpow2.f32 %v69_v22 }
  0xb4   :  { %269 = vpow2.f32 %v73_v23 }
  0xbc   :  { %v264_v24 = vpop.eup %263 }
  0xbd   :  { %v266_v25 = vpop.eup %265  ;;  %v75_v26 = vsel %vm50_vm0, %v264_v24, 0.0 }
  0xbe   :  { %76 = vadd.xlane.f32.xlu0 %v75_v26  ;;  %v81_v27 = vsel %vm50_vm0, %v266_v25, 0.0 }
  0xc0   :  { %v268_v28 = vpop.eup %267 }
  0xc1   :  { %v270_v29 = vpop.eup %269  ;;  %v78_v30 = vsel %vm50_vm0, %v268_v28, 0.0 }
  0xc2   :  { %82 = vadd.xlane.f32.xlu0 %v81_v27  ;;  %79 = vadd.xlane.f32.xlu1 %v78_v30  ;;  %v84_v31 = vsel %vm50_vm0, %v270_v29, 0.0 }
  0xc6   :  { %85 = vadd.xlane.f32.xlu1 %v84_v31 }
 0x147   :  { %v77_v32 = vpop.xlane.xlu0 %76 }
 0x148   :  { %271 = vlog2.f32 %v77_v32 }
 0x14b   :  { %v80_v33 = vpop.xlane.xlu1 %79  ;;  %v83_v34 = vpop.xlane.xlu0 %82 }
 0x14c   :  { %273 = vlog2.f32 %v80_v33 }
 0x14d   :  { %275 = vlog2.f32 %v83_v34 }
 0x14f   :  { %v86_v35 = vpop.xlane.xlu1 %85 }
 0x150   :  { %277 = vlog2.f32 %v86_v35 }
 0x151   :  { %279 = vrcp.f32 %v77_v32 }
 0x152   :  { %281 = vrcp.f32 %v80_v33 }
 0x153   :  { %283 = vrcp.f32 %v83_v34 }
 0x154   :  { %285 = vrcp.f32 %v86_v35 }
 0x155   :  { %v272_v36 = vpop.eup %271 }
 0x156   :  { %v88_v37 = vmul.f32 0.6931472, %v272_v36 }
 0x158   :  { %v95_v38 = vadd.f32 %v88_v37, %v53_v12 }
 0x159   :  { %v274_v39 = vpop.eup %273 }
 0x15a   :  { %v90_v40 = vmul.f32 0.6931472, %v274_v39  ;;  %v99_v41 = vsub.f32 %v46_v3, %v95_v38  ;;  %v276_v43 = vpop.eup %275  ;;  %v153_v62 = vsel %vm152_vm1, %v95_v38, 0.0 }
 0x15b   :  { %v92_v44 = vmul.f32 0.6931472, %v276_v43 }
 0x15c   :  { %v124_v45 = vmul.f32 %v264_v24, %v99_v41  ;;  %v96_v46 = vadd.f32 %v90_v40, %v56_v18  ;;  %v104_v48 = vmul.f32 %v103_v42, %v99_v41 }
 0x15d   :  { %v278_v47 = vpop.eup %277  ;;  %v97_v52 = vadd.f32 %v92_v44, %v59_v13 }
 0x15e   :  { %v94_v49 = vmul.f32 0.6931472, %v278_v47  ;;  %v128_v50 = vsel %vm50_vm0, %v124_v45, 0.0  ;;  %v100_v51 = vsub.f32 %v47_v5, %v96_v46  ;;  %v108_v55 = vsel %vm50_vm0, %v104_v48, 0.0  ;;  %v280_v14 = vpop.eup %279 }
 0x15f   :  { %129 = vadd.xlane.f32.xlu0 %v128_v50  ;;  %v101_v56 = vsub.f32 %v433_v4, %v97_v52  ;;  %v154_v60 = vsel %vm152_vm1, %v96_v46, 0.0  ;;  %v156_v4 = vsel %vm152_vm1, %v97_v52, 0.0 }
 0x160   :  { %v125_v53 = vmul.f32 %v268_v28, %v100_v51  ;;  %v98_v54 = vadd.f32 %v94_v49, %v62_v19  ;;  %v105_v58 = vmul.f32 %v103_v42, %v100_v51  ;;  %v155_v63 = vadd.f32 %v154_v60, %v153_v62  ;;  %v282_v19 = vpop.eup %281 }
 0x161   :  { %v126_v61 = vmul.f32 %v266_v25, %v101_v56  ;;  %v106_v3 = vmul.f32 %v103_v42, %v101_v56  ;;  %v284_v27 = vpop.eup %283 }
 0x162   :  { %v131_v57 = vsel %vm50_vm0, %v125_v53, 0.0  ;;  %v102_v59 = vsub.f32 %v435_v7, %v98_v54  ;;  %v111_v0 = vsel %vm50_vm0, %v105_v58, 0.0  ;;  %v157_v5 = vadd.f32 %v156_v4, %v155_v63  ;;  %v286_v37 = vpop.eup %285 }
 0x163   :  { %132 = vadd.xlane.f32.xlu1 %v131_v57  ;;  %109 = vadd.xlane.f32.xlu0 %v108_v55  ;;  %v134_v1 = vsel %vm50_vm0, %v126_v61, 0.0  ;;  %v114_v7 = vsel %vm50_vm0, %v106_v3, 0.0  ;;  %v158_v8 = vsel %vm152_vm1, %v98_v54, 0.0 }
 0x164   :  { %v127_v2 = vmul.f32 %v270_v29, %v102_v59  ;;  %v107_v9 = vmul.f32 %v103_v42, %v102_v59  ;;  %v159_v10 = vadd.f32 %v158_v8, %v157_v5 }
 0x166   :  { %v137_v6 = vsel %vm50_vm0, %v127_v2, 0.0  ;;  %v117_v11 = vsel %vm50_vm0, %v107_v9, 0.0 }
 0x167   :  { %112 = vadd.xlane.f32.xlu1 %v111_v0  ;;  %135 = vadd.xlane.f32.xlu0 %v134_v1 }
 0x16b   :  { %138 = vadd.xlane.f32.xlu0 %v137_v6  ;;  %115 = vadd.xlane.f32.xlu1 %v114_v7 }
 0x16f   :  { %160 = vadd.xlane.f32.xlu0 %v159_v10  ;;  %118 = vadd.xlane.f32.xlu1 %v117_v11 }
 0x1e8   :  { %v130_v12 = vpop.xlane.xlu0 %129 }
 0x1e9   :  { %v140_v13 = vsub.f32 0.0, %v130_v12 }
 0x1eb   :  { %v145_v17 = vmul.f32 %v280_v14, %v140_v13 }
 0x1ec   :  { %v133_v15 = vpop.xlane.xlu1 %132  ;;  %v110_v16 = vpop.xlane.xlu0 %109 }
 0x1ed   :  { %v141_v18 = vsub.f32 0.0, %v133_v15  ;;  %v189_v23 = vsel %vm152_vm1, %v145_v17, 0.0  ;;  %v120_v29 = vsub.f32 0.0, %v110_v16 }
 0x1ef   :  { %v147_v20 = vmul.f32 %v282_v19, %v141_v18  ;;  %v171_v38 = vsel %vm152_vm1, %v120_v29, 0.0 }
 0x1f0   :  { %v113_v21 = vpop.xlane.xlu1 %112  ;;  %v136_v22 = vpop.xlane.xlu0 %135 }
 0x1f1   :  { %v190_v24 = vsel %vm152_vm1, %v147_v20, 0.0  ;;  %v121_v25 = vsub.f32 0.0, %v113_v21  ;;  %v142_v26 = vsub.f32 0.0, %v136_v22 }
 0x1f2   :  { %v191_v28 = vadd.f32 %v190_v24, %v189_v23 }
 0x1f3   :  { %v149_v30 = vmul.f32 %v284_v27, %v142_v26  ;;  %v172_v33 = vsel %vm152_vm1, %v121_v25, 0.0 }
 0x1f4   :  { %v116_v31 = vpop.xlane.xlu1 %115  ;;  %v139_v32 = vpop.xlane.xlu0 %138  ;;  %v173_v41 = vadd.f32 %v172_v33, %v171_v38 }
 0x1f5   :  { %v122_v34 = vsub.f32 0.0, %v116_v31  ;;  %v143_v35 = vsub.f32 0.0, %v139_v32  ;;  %v192_v36 = vsel %vm152_vm1, %v149_v30, 0.0 }
 0x1f6   :  { %v193_v44 = vadd.f32 %v192_v36, %v191_v28 }
 0x1f7   :  { %v174_v39 = vsel %vm152_vm1, %v122_v34, 0.0  ;;  %v151_v40 = vmul.f32 %v286_v37, %v143_v35 }
 0x1f8   :  { %v119_v42 = vpop.xlane.xlu1 %118  ;;  %v161_v43 = vpop.xlane.xlu0 %160  ;;  %v175_v49 = vadd.f32 %v174_v39, %v173_v41 }
 0x1f9   :  { %v123_v45 = vsub.f32 0.0, %v119_v42  ;;  %v162_v46 = vrot.slane %v161_v43, 4  ;;  %v194_v47 = vsel %vm152_vm1, %v151_v40, 0.0 }
 0x1fa   :  { %v195_v48 = vadd.f32 %v194_v47, %v193_v44 }
 0x1fb   :  { %v163_v50 = vadd.f32 %v162_v46, %v161_v43  ;;  %v176_v51 = vsel %vm152_vm1, %v123_v45, 0.0 }
 0x1fc   :  { %196 = vadd.xlane.f32.xlu0 %v195_v48  ;;  %v177_v52 = vadd.f32 %v176_v51, %v175_v49 }
 0x1fd   :  { %v164_v53 = vrot.slane %v163_v50, 2 }
 0x1fe   :  { %178 = vadd.xlane.f32.xlu1 %v177_v52 }
 0x1ff   :  { %v165_v54 = vadd.f32 %v164_v53, %v163_v50 }
 0x201   :  { %v166_v55 = vrot.slane %v165_v54, 1 }
 0x203   :  { %v167_v56 = vadd.f32 %v166_v55, %v165_v54 }
 0x205   :  { %250 = vpush %v167_v56 }
 0x236   :  { %s251_s0 = spop %250 }
 0x237   :  { %v169_v57 = vstv %s251_s0 }
 0x238   :  { %170 = vst [vmem:[#allocation7] sm:$0xff] %v169_v57 }
 0x239   :  { %338 = shalt.err (!%p335_p0)
}
 0x23a   :  { %216 = dma.vmem_to_hbm [thread:$0]  %s214_s27, 128, %s482_s2, [#allocation4]  }
 0x23b   :  { %s400_s5 = smov [#allocation8]   ;;  %s401_s7 = smov [#allocation10]  }
 0x23c   :  { %s223_s6 = sshll.u32 %s400_s5, 4  ;;  %s233_s2 = sshll.u32 %s401_s7, 4  ;;  %s224_s6 = int_to_ptr.vmem [resolvable:$true] %s223_s6  ;;  %s234_s2 = int_to_ptr.vmem [resolvable:$true] %s233_s2 }
 0x23d   :  { %s347_s10 = scalar_lea.vmem %s224_s6, 128  ;;  %p352_p2 = scmp.lt.s32.totalorder %s224_s6, %s224_s6 }
 0x23e   :  { %p348_p1 = scmp.ne.s32.totalorder %s224_s6, %s347_s10  ;;  %p353_p3 = scmp.lt.s32.totalorder %s347_s10, %s347_s10 }
 0x240   :  { %p354_p4 = por %p353_p3, %p352_p2 }
 0x242   :  { %p355_p5 = pnand %p354_p4, %p348_p1 }
 0x285   :  { %v197_v58 = vpop.xlane.xlu0 %196 }
 0x286   :  { %v198_v59 = vrot.slane %v197_v58, 4 }
 0x287   :  { %v179_v60 = vpop.xlane.xlu1 %178 }
 0x288   :  { %v199_v61 = vadd.f32 %v198_v59, %v197_v58  ;;  %v180_v62 = vrot.slane %v179_v60, 4 }
 0x28a   :  { %v200_v63 = vrot.slane %v199_v61, 2  ;;  %v181_v0 = vadd.f32 %v180_v62, %v179_v60 }
 0x28c   :  { %v201_v1 = vadd.f32 %v200_v63, %v199_v61  ;;  %v182_v2 = vrot.slane %v181_v0, 2 }
 0x28e   :  { %v183_v3 = vadd.f32 %v182_v2, %v181_v0  ;;  %v202_v4 = vrot.slane %v201_v1, 1 }
 0x290   :  { %v184_v5 = vrot.slane %v183_v3, 1  ;;  %v203_v7 = vadd.f32 %v202_v4, %v201_v1 }
 0x292   :  { %v185_v6 = vadd.f32 %v184_v5, %v183_v3 }
 0x294   :  { %252 = vpush %v185_v6 }
 0x295   :  { %254 = vpush %v203_v7 }
 0x2c5   :  { %s253_s8 = spop %252 }
 0x2c6   :  { %v187_v8 = vstv %s253_s8  ;;  %s255_s9 = spop %254 }
 0x2c7   :  { %188 = vst [vmem:[#allocation8] sm:$0xff] %v187_v8  ;;  %v205_v9 = vstv %s255_s9 }
 0x2c8   :  { %206 = vst [vmem:[#allocation10] sm:$0xff] %v205_v9 }
 0x2c9   :  { %358 = shalt.err (!%p355_p5)
}
 0x2ca   :  { %226 = dma.vmem_to_hbm [thread:$0]  %s224_s6, 128, %s483_s3, [#allocation9]  }
 0x2cb   :  { %s367_s13 = scalar_lea.vmem %s234_s2, 128  ;;  %p372_p7 = scmp.lt.s32.totalorder %s234_s2, %s234_s2 }
 0x2cc   :  { %p368_p6 = scmp.ne.s32.totalorder %s234_s2, %s367_s13  ;;  %p373_p8 = scmp.lt.s32.totalorder %s367_s13, %s367_s13 }
 0x2ce   :  { %p374_p9 = por %p373_p8, %p372_p7 }
 0x2d0   :  { %p375_p10 = pnand %p374_p9, %p368_p6 }
 0x2d2   :  { %378 = shalt.err (!%p375_p10)
}
 0x2d3   :  { %236 = dma.vmem_to_hbm [thread:$0]  %s234_s2, 128, %s484_s4, [#allocation9]  }
 0x2d4   :  { %391 = dma.done.wait [#allocation4], 128  }
 0x2d5   :  { %392 = vsyncadd [#allocation4], 4294967168 }
 0x2d6   :  { %393 = dma.done.wait [#allocation9], 256  }
 0x2d7   :  { %394 = vsyncadd [#allocation9], 4294967040 }
 0x2d8   :  { %246 = vsyncpa [#allocation3], 1 }
 0x2d9   :  { %247 = vsyncpa [#allocation6], 1 }
 0x2da   :  { %248 = vsyncpa [#allocation4], 1 }
 0x2db   :  { %249 = vsyncpa [#allocation9], 1 }

</bundles_post_ra>
